<compile_context>
chip_gen: v6e
topology: v6e:2x2x1
jax: 0.10.0
libtpu: 0.0.40
codegen_flags: <defaults>
</compile_context>

<pallas_src>
import functools

import jax
import jax.numpy as jnp
from jax.experimental import pallas as pl
from jax.experimental.pallas import tpu as pltpu


def _round_up(n, m):
    return ((n + m - 1) // m) * m


# ----------------------------- Pallas kernel ------------------------------
def _cvae_kernel(
    # batch-tiled inputs
    xc_ref, eps_ref,
    # packed / padded parameters (bf16 weights, f32 biases)
    w1_ref, b_e1_ref, b_d1_ref,
    w_e2_ref, b_e2_ref,
    w_mulv_ref, b_mulv_ref,
    w_d1z_ref,
    w_d2_ref, b_d2_ref,
    w_d3_ref, b_d3_ref,
    # outputs
    recon_ref, mulv_ref,
    *, lv_off,
):
    f32 = jnp.float32
    bf16 = jnp.bfloat16

    xc = xc_ref[...].astype(bf16)

    # Fused layer-1: [x | cond] @ [[enc1_x | 0], [enc1_c | dec1_c]] -> (bb, 384)
    proj = jnp.dot(xc, w1_ref[...], preferred_element_type=f32)
    h1 = jnp.maximum(proj[:, :256] + b_e1_ref[...], 0.0)   # encoder fc1 + ReLU
    c_dec = proj[:, 256:]                                   # decoder fc1 cond part

    # -------- Encoder --------
    h2 = jnp.dot(h1.astype(bf16), w_e2_ref[...], preferred_element_type=f32) + b_e2_ref[...]
    h2 = jnp.maximum(h2, 0.0)

    # Fused mu|logvar projection packed into one 128-lane slab:
    #   lanes [0:lv_off) = mu (zero-padded), lanes [lv_off:2*lv_off) = logvar.
    mulv = jnp.dot(h2.astype(bf16), w_mulv_ref[...], preferred_element_type=f32) + b_mulv_ref[...]
    mulv_ref[...] = mulv                                    # lane-dense (bb, 128) f32 store

    mu = mulv[:, :lv_off]
    logvar = mulv[:, lv_off:]

    # -------- Reparameterize (eps supplied; padded lanes of everything are 0) --------
    z = mu + eps_ref[...] * jnp.exp(0.5 * logvar)

    # -------- Decoder --------
    g1 = jnp.dot(z.astype(bf16), w_d1z_ref[...], preferred_element_type=f32) + c_dec + b_d1_ref[...]
    g1 = jnp.maximum(g1, 0.0)

    g2 = jnp.dot(g1.astype(bf16), w_d2_ref[...], preferred_element_type=f32) + b_d2_ref[...]
    g2 = jnp.maximum(g2, 0.0)

    logits = jnp.dot(g2.astype(bf16), w_d3_ref[...], preferred_element_type=f32) + b_d3_ref[...]
    recon_ref[...] = jax.nn.sigmoid(logits).astype(recon_ref.dtype)   # lane-dense bf16 store


_PARAM_ORDER = [
    "w_1", "b_e1", "b_d1",
    "w_e2", "b_e2",
    "w_mulv", "b_mulv",
    "w_d1z",
    "w_d2", "b_d2",
    "w_d3", "b_d3",
]


# ----------------------------- wrapper ------------------------------------
def cvae_forward(x, condition, eps, kparams, output_dim, *, block_batch=None):
    """CVAE forward in a single Pallas kernel, tiled over the (padded) batch."""
    B, _ = x.shape
    _, latent_dim = eps.shape
    in_cond = kparams["w_1"].shape[0]
    mulv_width = kparams["w_mulv"].shape[1]
    lv_off = mulv_width // 2
    out_pad = kparams["w_d3"].shape[1]

    b8 = _round_up(B, 8)
    if block_batch is None:
        # Aim for >= ~4 grid steps when the batch allows it (dual-TC sharding of
        # the "parallel" axis on v7x + DMA/compute overlap everywhere), tiles
        # capped at 256 rows.  16-row granularity keeps bf16 output tiles on the
        # native (16, 128) tiling.
        block_batch = min(256, max(16, _round_up((b8 + 3) // 4, 16)))
    Bp = _round_up(b8, block_batch)

    # Pre-concat x||cond for the fused layer-1 dot; pad batch rows with zeros.
    xc = jnp.concatenate([x, condition], axis=1)
    xcp = jnp.pad(xc, ((0, Bp - B), (0, 0))) if Bp != B else xc
    # eps padded to the 64-lane mu geometry (padded lanes/rows stay zero).
    epsp = jnp.zeros((Bp, lv_off), jnp.float32).at[:B, :latent_dim].set(eps)

    grid = (Bp // block_batch,)

    def batch_spec(feat):
        return pl.BlockSpec((block_batch, feat), lambda i: (i, 0))

    def full_spec(shape):
        return pl.BlockSpec(shape, lambda i: (0, 0))

    in_specs = [
        batch_spec(in_cond),     # x || condition
        batch_spec(lv_off),      # eps (64-lane slab)
    ] + [full_spec(kparams[name].shape) for name in _PARAM_ORDER]

    out_specs = (
        batch_spec(out_pad),     # recon (bf16, padded lanes)
        batch_spec(mulv_width),  # mu | logvar packed slab (f32)
    )

    out_shape = (
        jax.ShapeDtypeStruct((Bp, out_pad), jnp.bfloat16),
        jax.ShapeDtypeStruct((Bp, mulv_width), jnp.float32),
    )

    # HBM-roofline hint so XLA schedules neighboring pad/slice ops sensibly.
    param_bytes = sum(int(kparams[n].size) * int(kparams[n].dtype.itemsize)
                      for n in _PARAM_ORDER)
    flops = 2 * Bp * (in_cond * 384 + 256 * 128 + 128 * mulv_width
                      + lv_off * 128 + 128 * 256 + 256 * out_pad)
    bytes_accessed = (Bp * in_cond * 4 + Bp * lv_off * 4 + param_bytes
                      + Bp * out_pad * 2 + Bp * mulv_width * 4)
    cost = pl.CostEstimate(flops=int(flops),
                           transcendentals=int(Bp * (lv_off + 2 * out_pad)),
                           bytes_accessed=int(bytes_accessed))

    fn = pl.pallas_call(
        functools.partial(_cvae_kernel, lv_off=lv_off),
        out_shape=out_shape,
        grid_spec=pltpu.PrefetchScalarGridSpec(
            num_scalar_prefetch=0,
            grid=grid,
            in_specs=in_specs,
            out_specs=out_specs,
        ),
        compiler_params=pltpu.CompilerParams(
            dimension_semantics=("parallel",),
        ),
        cost_estimate=cost,
    )

    args = [xcp, epsp] + [kparams[name] for name in _PARAM_ORDER]
    recon_pad, mulv = fn(*args)

    recon = recon_pad[:B, :output_dim].astype(jnp.float32)
    mu = mulv[:B, :latent_dim]
    logvar = mulv[:B, lv_off:lv_off + latent_dim]
    return recon, mu, logvar


# ----------------------------- params -------------------------------------
def init_params(key, input_dim, condition_dim, latent_dim, output_dim):
    """PyTorch-equivalent parameters, stored transposed as (in, out), f32."""
    def linear(k, fan_in, fan_out):
        kw, kb = jax.random.split(k)
        bound = 1.0 / jnp.sqrt(fan_in)
        w = jax.random.uniform(kw, (fan_in, fan_out), jnp.float32, -bound, bound)
        b = jax.random.uniform(kb, (1, fan_out), jnp.float32, -bound, bound)
        return w, b

    ks = jax.random.split(key, 7)
    e_w1, e_b1 = linear(ks[0], input_dim + condition_dim, 256)
    e_w2, e_b2 = linear(ks[1], 256, 128)
    e_wmu, e_bmu = linear(ks[2], 128, latent_dim)
    e_wlv, e_blv = linear(ks[3], 128, latent_dim)
    d_w1, d_b1 = linear(ks[4], latent_dim + condition_dim, 128)
    d_w2, d_b2 = linear(ks[5], 128, 256)
    d_w3, d_b3 = linear(ks[6], 256, output_dim)
    return {
        "e_w1": e_w1, "e_b1": e_b1, "e_w2": e_w2, "e_b2": e_b2,
        "e_wmu": e_wmu, "e_bmu": e_bmu, "e_wlv": e_wlv, "e_blv": e_blv,
        "d_w1": d_w1, "d_b1": d_b1, "d_w2": d_w2, "d_b2": d_b2,
        "d_w3": d_w3, "d_b3": d_b3,
    }


def pack_params(p, input_dim, condition_dim, latent_dim, output_dim):
    """Pack/fuse/pad parameters for the kernel (bf16 weights, f32 biases)."""
    bf16 = jnp.bfloat16
    f32 = jnp.float32
    in_cond = input_dim + condition_dim
    mulv_width = _round_up(2 * latent_dim, 128)
    lv_off = mulv_width // 2
    out_pad = _round_up(output_dim, 128)

    kp = {}
    # Fused layer-1 weight: [x|cond] @ [[enc1_x | 0], [enc1_c | dec1_c]] -> (in+cond, 384)
    w1 = jnp.zeros((in_cond, 256 + 128), f32)
    w1 = w1.at[:, :256].set(p["e_w1"])
    w1 = w1.at[input_dim:, 256:].set(p["d_w1"][latent_dim:])
    kp["w_1"] = w1.astype(bf16)
    kp["b_e1"] = p["e_b1"].astype(f32)
    kp["b_d1"] = p["d_b1"].astype(f32)

    kp["w_e2"] = p["e_w2"].astype(bf16)
    kp["b_e2"] = p["e_b2"].astype(f32)

    # Fused mu|logvar projection packed into ONE 128-lane slab:
    #   mu at lanes [0:latent_dim), logvar at lanes [lv_off:lv_off+latent_dim).
    w_mulv = jnp.zeros((128, mulv_width), f32)
    w_mulv = w_mulv.at[:, :latent_dim].set(p["e_wmu"])
    w_mulv = w_mulv.at[:, lv_off:lv_off + latent_dim].set(p["e_wlv"])
    kp["w_mulv"] = w_mulv.astype(bf16)
    b_mulv = jnp.zeros((1, mulv_width), f32)
    b_mulv = b_mulv.at[:, :latent_dim].set(p["e_bmu"])
    b_mulv = b_mulv.at[:, lv_off:lv_off + latent_dim].set(p["e_blv"])
    kp["b_mulv"] = b_mulv

    # Decoder fc1, z-part, contraction dim padded to lv_off (padded rows zero).
    w_d1z = jnp.zeros((lv_off, 128), f32).at[:latent_dim].set(p["d_w1"][:latent_dim])
    kp["w_d1z"] = w_d1z.astype(bf16)

    kp["w_d2"] = p["d_w2"].astype(bf16)
    kp["b_d2"] = p["d_b2"].astype(f32)

    # Decoder fc3, lane-padded output.
    w_d3 = jnp.zeros((256, out_pad), f32).at[:, :output_dim].set(p["d_w3"])
    kp["w_d3"] = w_d3.astype(bf16)
    kp["b_d3"] = jnp.zeros((1, out_pad), f32).at[:, :output_dim].set(p["d_b3"])
    return kp


# ----------------------------- reference ----------------------------------
def cvae_ref(x, condition, eps, p, input_dim, latent_dim):
    """Pure-JAX reference mirroring the kernel's bf16-weight / f32-accum math."""
    def mm(a, w):
        return jnp.dot(a.astype(jnp.bfloat16), w.astype(jnp.bfloat16),
                       preferred_element_type=jnp.float32)

    h = jnp.maximum(mm(x, p["e_w1"][:input_dim]) + mm(condition, p["e_w1"][input_dim:])
                    + p["e_b1"], 0.0)
    h = jnp.maximum(mm(h, p["e_w2"]) + p["e_b2"], 0.0)
    mu = mm(h, p["e_wmu"]) + p["e_bmu"]
    logvar = mm(h, p["e_wlv"]) + p["e_blv"]
    z = mu + eps * jnp.exp(0.5 * logvar)
    g = jnp.maximum(mm(z, p["d_w1"][:latent_dim]) + mm(condition, p["d_w1"][latent_dim:])
                    + p["d_b1"], 0.0)
    g = jnp.maximum(mm(g, p["d_w2"]) + p["d_b2"], 0.0)
    recon = jax.nn.sigmoid(mm(g, p["d_w3"]) + p["d_b3"])
    return recon, mu, logvar


if __name__ == "__main__":
    # (bs*t, dim) convention of the module; B=64 gives a 4-step "parallel" grid.
    B = 64
    input_dim, condition_dim, latent_dim, output_dim = 16, 8, 4, 16

    key = jax.random.PRNGKey(0)
    k_params, k_x, k_c, k_eps = jax.random.split(key, 4)

    params = init_params(k_params, input_dim, condition_dim, latent_dim, output_dim)
    kparams = pack_params(params, input_dim, condition_dim, latent_dim, output_dim)

    x = jax.random.normal(k_x, (B, input_dim), jnp.float32)
    condition = jax.random.normal(k_c, (B, condition_dim), jnp.float32)
    # randn_like(std) from reparameterize, generated outside for determinism.
    # TODO(synk): torch.randn_like inside reparameterize has no in-kernel
    # deterministic equivalent here; eps is supplied from jax.random instead.
    eps = jax.random.normal(k_eps, (B, latent_dim), jnp.float32)

    recon, mu, logvar = cvae_forward(x, condition, eps, kparams, output_dim)
    jax.block_until_ready((recon, mu, logvar))

    r_ref, mu_ref, lv_ref = cvae_ref(x, condition, eps, params, input_dim, latent_dim)
    # recon is stored as bf16 in the kernel -> looser tolerance than mu/logvar.
    assert jnp.allclose(recon, r_ref, atol=1e-2, rtol=1e-2), "recon mismatch"
    assert jnp.allclose(mu, mu_ref, atol=1e-3, rtol=1e-3), "mu mismatch"
    assert jnp.allclose(logvar, lv_ref, atol=1e-3, rtol=1e-3), "logvar mismatch"

    print("KERNEL_OK")
</pallas_src>

<mosaic_0001>
module attributes {stable_mosaic.version = 11 : i64} {
  func.func @_cvae_kernel(%arg0: i32, %arg1: memref<16x24xf32, #tpu.memory_space<vmem>>, %arg2: memref<16x64xf32, #tpu.memory_space<vmem>>, %arg3: memref<24x384xbf16, #tpu.memory_space<vmem>>, %arg4: memref<1x256xf32, #tpu.memory_space<vmem>>, %arg5: memref<1x128xf32, #tpu.memory_space<vmem>>, %arg6: memref<256x128xbf16, #tpu.memory_space<vmem>>, %arg7: memref<1x128xf32, #tpu.memory_space<vmem>>, %arg8: memref<128x128xbf16, #tpu.memory_space<vmem>>, %arg9: memref<1x128xf32, #tpu.memory_space<vmem>>, %arg10: memref<64x128xbf16, #tpu.memory_space<vmem>>, %arg11: memref<128x256xbf16, #tpu.memory_space<vmem>>, %arg12: memref<1x256xf32, #tpu.memory_space<vmem>>, %arg13: memref<256x128xbf16, #tpu.memory_space<vmem>>, %arg14: memref<1x128xf32, #tpu.memory_space<vmem>>, %arg15: memref<16x128xbf16, #tpu.memory_space<vmem>>, %arg16: memref<16x128xf32, #tpu.memory_space<vmem>>) attributes {dimension_semantics = [#tpu.dimension_semantics<parallel>], iteration_bounds = array<i64: 4>, scalar_prefetch = 0 : i64, scratch_operands = 0 : i64, tpu.core_type = #tpu.core_type<tc>, window_params = [{transform_indices = @transform_0, window_bounds = array<i64: 16, 24>}, {transform_indices = @transform_1, window_bounds = array<i64: 16, 64>}, {pipeline_mode = #tpu.pipeline_mode<synchronous>, transform_indices = @transform_2, window_bounds = array<i64: 24, 384>}, {pipeline_mode = #tpu.pipeline_mode<synchronous>, transform_indices = @transform_3, window_bounds = array<i64: 1, 256>}, {pipeline_mode = #tpu.pipeline_mode<synchronous>, transform_indices = @transform_4, window_bounds = array<i64: 1, 128>}, {pipeline_mode = #tpu.pipeline_mode<synchronous>, transform_indices = @transform_5, window_bounds = array<i64: 256, 128>}, {pipeline_mode = #tpu.pipeline_mode<synchronous>, transform_indices = @transform_6, window_bounds = array<i64: 1, 128>}, {pipeline_mode = #tpu.pipeline_mode<synchronous>, transform_indices = @transform_7, window_bounds = array<i64: 128, 128>}, {pipeline_mode = #tpu.pipeline_mode<synchronous>, transform_indices = @transform_8, window_bounds = array<i64: 1, 128>}, {pipeline_mode = #tpu.pipeline_mode<synchronous>, transform_indices = @transform_9, window_bounds = array<i64: 64, 128>}, {pipeline_mode = #tpu.pipeline_mode<synchronous>, transform_indices = @transform_10, window_bounds = array<i64: 128, 256>}, {pipeline_mode = #tpu.pipeline_mode<synchronous>, transform_indices = @transform_11, window_bounds = array<i64: 1, 256>}, {pipeline_mode = #tpu.pipeline_mode<synchronous>, transform_indices = @transform_12, window_bounds = array<i64: 256, 128>}, {pipeline_mode = #tpu.pipeline_mode<synchronous>, transform_indices = @transform_13, window_bounds = array<i64: 1, 128>}, {transform_indices = @transform_14, window_bounds = array<i64: 16, 128>}, {transform_indices = @transform_15, window_bounds = array<i64: 16, 128>}]} {
    %c0 = arith.constant 0 : index
    %c0_0 = arith.constant 0 : index
    %0 = vector.load %arg1[%c0, %c0_0] : memref<16x24xf32, #tpu.memory_space<vmem>>, vector<16x24xf32>
    %1 = arith.truncf %0 : vector<16x24xf32> to vector<16x24xbf16>
    %c0_1 = arith.constant 0 : index
    %c0_2 = arith.constant 0 : index
    %2 = vector.load %arg3[%c0_1, %c0_2] : memref<24x384xbf16, #tpu.memory_space<vmem>>, vector<24x384xbf16>
    %cst = arith.constant dense<0.000000e+00> : vector<16x384xf32>
    %3 = tpu.matmul %1, %2, %cst {dimension_numbers = #tpu.dot_dimension_numbers<[1], [0], [0], [1], [0, 0, 1, 1], [], []>} : vector<16x24xbf16>, vector<24x384xbf16>, vector<16x384xf32> -> vector<16x384xf32>
    %4 = vector.extract_strided_slice %3 {offsets = [0, 0], sizes = [16, 256], strides = [1, 1]} : vector<16x384xf32> to vector<16x256xf32>
    %c0_3 = arith.constant 0 : index
    %c0_4 = arith.constant 0 : index
    %5 = vector.load %arg4[%c0_3, %c0_4] : memref<1x256xf32, #tpu.memory_space<vmem>>, vector<1x256xf32>
    %6 = vector.broadcast %5 : vector<1x256xf32> to vector<16x256xf32>
    %7 = arith.addf %4, %6 : vector<16x256xf32>
    %cst_5 = arith.constant 0.000000e+00 : f32
    %8 = vector.broadcast %cst_5 : f32 to vector<16x256xf32>
    %9 = arith.maximumf %7, %8 : vector<16x256xf32>
    %10 = vector.extract_strided_slice %3 {offsets = [0, 256], sizes = [16, 128], strides = [1, 1]} : vector<16x384xf32> to vector<16x128xf32>
    %11 = arith.truncf %9 : vector<16x256xf32> to vector<16x256xbf16>
    %c0_6 = arith.constant 0 : index
    %c0_7 = arith.constant 0 : index
    %12 = vector.load %arg6[%c0_6, %c0_7] : memref<256x128xbf16, #tpu.memory_space<vmem>>, vector<256x128xbf16>
    %cst_8 = arith.constant dense<0.000000e+00> : vector<16x128xf32>
    %13 = tpu.matmul %11, %12, %cst_8 {dimension_numbers = #tpu.dot_dimension_numbers<[1], [0], [0], [1], [0, 0, 1, 1], [], []>} : vector<16x256xbf16>, vector<256x128xbf16>, vector<16x128xf32> -> vector<16x128xf32>
    %c0_9 = arith.constant 0 : index
    %c0_10 = arith.constant 0 : index
    %14 = vector.load %arg7[%c0_9, %c0_10] : memref<1x128xf32, #tpu.memory_space<vmem>>, vector<1x128xf32>
    %15 = vector.broadcast %14 : vector<1x128xf32> to vector<16x128xf32>
    %16 = arith.addf %13, %15 : vector<16x128xf32>
    %cst_11 = arith.constant 0.000000e+00 : f32
    %17 = vector.broadcast %cst_11 : f32 to vector<16x128xf32>
    %18 = arith.maximumf %16, %17 : vector<16x128xf32>
    %19 = arith.truncf %18 : vector<16x128xf32> to vector<16x128xbf16>
    %c0_12 = arith.constant 0 : index
    %c0_13 = arith.constant 0 : index
    %20 = vector.load %arg8[%c0_12, %c0_13] : memref<128x128xbf16, #tpu.memory_space<vmem>>, vector<128x128xbf16>
    %cst_14 = arith.constant dense<0.000000e+00> : vector<16x128xf32>
    %21 = tpu.matmul %19, %20, %cst_14 {dimension_numbers = #tpu.dot_dimension_numbers<[1], [0], [0], [1], [0, 0, 1, 1], [], []>} : vector<16x128xbf16>, vector<128x128xbf16>, vector<16x128xf32> -> vector<16x128xf32>
    %c0_15 = arith.constant 0 : index
    %c0_16 = arith.constant 0 : index
    %22 = vector.load %arg9[%c0_15, %c0_16] : memref<1x128xf32, #tpu.memory_space<vmem>>, vector<1x128xf32>
    %23 = vector.broadcast %22 : vector<1x128xf32> to vector<16x128xf32>
    %24 = arith.addf %21, %23 : vector<16x128xf32>
    %c0_17 = arith.constant 0 : index
    %c0_18 = arith.constant 0 : index
    %25 = vector.load %arg16[%c0_17, %c0_18] : memref<16x128xf32, #tpu.memory_space<vmem>>, vector<16x128xf32>
    tpu.vector_store %arg16[%c0_17, %c0_18], %24 {strides = array<i32>} : memref<16x128xf32, #tpu.memory_space<vmem>>, vector<16x128xf32>,
    %26 = vector.extract_strided_slice %24 {offsets = [0, 0], sizes = [16, 64], strides = [1, 1]} : vector<16x128xf32> to vector<16x64xf32>
    %27 = vector.extract_strided_slice %24 {offsets = [0, 64], sizes = [16, 64], strides = [1, 1]} : vector<16x128xf32> to vector<16x64xf32>
    %c0_19 = arith.constant 0 : index
    %c0_20 = arith.constant 0 : index
    %28 = vector.load %arg2[%c0_19, %c0_20] : memref<16x64xf32, #tpu.memory_space<vmem>>, vector<16x64xf32>
    %cst_21 = arith.constant 5.000000e-01 : f32
    %29 = vector.broadcast %cst_21 : f32 to vector<16x64xf32>
    %30 = arith.mulf %29, %27 : vector<16x64xf32>
    %31 = math.exp %30 : vector<16x64xf32>
    %32 = arith.mulf %28, %31 : vector<16x64xf32>
    %33 = arith.addf %26, %32 : vector<16x64xf32>
    %34 = arith.truncf %33 : vector<16x64xf32> to vector<16x64xbf16>
    %c0_22 = arith.constant 0 : index
    %c0_23 = arith.constant 0 : index
    %35 = vector.load %arg10[%c0_22, %c0_23] : memref<64x128xbf16, #tpu.memory_space<vmem>>, vector<64x128xbf16>
    %cst_24 = arith.constant dense<0.000000e+00> : vector<16x128xf32>
    %36 = tpu.matmul %34, %35, %cst_24 {dimension_numbers = #tpu.dot_dimension_numbers<[1], [0], [0], [1], [0, 0, 1, 1], [], []>} : vector<16x64xbf16>, vector<64x128xbf16>, vector<16x128xf32> -> vector<16x128xf32>
    %37 = arith.addf %36, %10 : vector<16x128xf32>
    %c0_25 = arith.constant 0 : index
    %c0_26 = arith.constant 0 : index
    %38 = vector.load %arg5[%c0_25, %c0_26] : memref<1x128xf32, #tpu.memory_space<vmem>>, vector<1x128xf32>
    %39 = vector.broadcast %38 : vector<1x128xf32> to vector<16x128xf32>
    %40 = arith.addf %37, %39 : vector<16x128xf32>
    %cst_27 = arith.constant 0.000000e+00 : f32
    %41 = vector.broadcast %cst_27 : f32 to vector<16x128xf32>
    %42 = arith.maximumf %40, %41 : vector<16x128xf32>
    %43 = arith.truncf %42 : vector<16x128xf32> to vector<16x128xbf16>
    %c0_28 = arith.constant 0 : index
    %c0_29 = arith.constant 0 : index
    %44 = vector.load %arg11[%c0_28, %c0_29] : memref<128x256xbf16, #tpu.memory_space<vmem>>, vector<128x256xbf16>
    %cst_30 = arith.constant dense<0.000000e+00> : vector<16x256xf32>
    %45 = tpu.matmul %43, %44, %cst_30 {dimension_numbers = #tpu.dot_dimension_numbers<[1], [0], [0], [1], [0, 0, 1, 1], [], []>} : vector<16x128xbf16>, vector<128x256xbf16>, vector<16x256xf32> -> vector<16x256xf32>
    %c0_31 = arith.constant 0 : index
    %c0_32 = arith.constant 0 : index
    %46 = vector.load %arg12[%c0_31, %c0_32] : memref<1x256xf32, #tpu.memory_space<vmem>>, vector<1x256xf32>
    %47 = vector.broadcast %46 : vector<1x256xf32> to vector<16x256xf32>
    %48 = arith.addf %45, %47 : vector<16x256xf32>
    %cst_33 = arith.constant 0.000000e+00 : f32
    %49 = vector.broadcast %cst_33 : f32 to vector<16x256xf32>
    %50 = arith.maximumf %48, %49 : vector<16x256xf32>
    %51 = arith.truncf %50 : vector<16x256xf32> to vector<16x256xbf16>
    %c0_34 = arith.constant 0 : index
    %c0_35 = arith.constant 0 : index
    %52 = vector.load %arg13[%c0_34, %c0_35] : memref<256x128xbf16, #tpu.memory_space<vmem>>, vector<256x128xbf16>
    %cst_36 = arith.constant dense<0.000000e+00> : vector<16x128xf32>
    %53 = tpu.matmul %51, %52, %cst_36 {dimension_numbers = #tpu.dot_dimension_numbers<[1], [0], [0], [1], [0, 0, 1, 1], [], []>} : vector<16x256xbf16>, vector<256x128xbf16>, vector<16x128xf32> -> vector<16x128xf32>
    %c0_37 = arith.constant 0 : index
    %c0_38 = arith.constant 0 : index
    %54 = vector.load %arg14[%c0_37, %c0_38] : memref<1x128xf32, #tpu.memory_space<vmem>>, vector<1x128xf32>
    %55 = vector.broadcast %54 : vector<1x128xf32> to vector<16x128xf32>
    %56 = arith.addf %53, %55 : vector<16x128xf32>
    %57 = arith.negf %56 : vector<16x128xf32>
    %58 = math.exp %57 : vector<16x128xf32>
    %cst_39 = arith.constant 1.000000e+00 : f32
    %59 = vector.broadcast %cst_39 : f32 to vector<16x128xf32>
    %60 = arith.addf %59, %58 : vector<16x128xf32>
    %61 = arith.divf %59, %60 : vector<16x128xf32>
    %62 = arith.truncf %61 : vector<16x128xf32> to vector<16x128xbf16>
    %c0_40 = arith.constant 0 : index
    %c0_41 = arith.constant 0 : index
    %63 = vector.load %arg15[%c0_40, %c0_41] : memref<16x128xbf16, #tpu.memory_space<vmem>>, vector<16x128xbf16>
    tpu.vector_store %arg15[%c0_40, %c0_41], %62 {strides = array<i32>} : memref<16x128xbf16, #tpu.memory_space<vmem>>, vector<16x128xbf16>,
    return
  }
  func.func @transform_0(%arg0: i32) -> (i32, i32) {
    %c0_i32 = arith.constant 0 : i32
    %c0_i32_0 = arith.constant 0 : i32
    return %arg0, %c0_i32 : i32, i32
  }
  func.func @transform_1(%arg0: i32) -> (i32, i32) {
    %c0_i32 = arith.constant 0 : i32
    %c0_i32_0 = arith.constant 0 : i32
    return %arg0, %c0_i32 : i32, i32
  }
  func.func @transform_2(%arg0: i32) -> (i32, i32) {
    %c0_i32 = arith.constant 0 : i32
    %c0_i32_0 = arith.constant 0 : i32
    %c0_i32_1 = arith.constant 0 : i32
    return %c0_i32, %c0_i32_0 : i32, i32
  }
  func.func @transform_3(%arg0: i32) -> (i32, i32) {
    %c0_i32 = arith.constant 0 : i32
    %c0_i32_0 = arith.constant 0 : i32
    %c0_i32_1 = arith.constant 0 : i32
    return %c0_i32, %c0_i32_0 : i32, i32
  }
  func.func @transform_4(%arg0: i32) -> (i32, i32) {
    %c0_i32 = arith.constant 0 : i32
    %c0_i32_0 = arith.constant 0 : i32
    %c0_i32_1 = arith.constant 0 : i32
    return %c0_i32, %c0_i32_0 : i32, i32
  }
  func.func @transform_5(%arg0: i32) -> (i32, i32) {
    %c0_i32 = arith.constant 0 : i32
    %c0_i32_0 = arith.constant 0 : i32
    %c0_i32_1 = arith.constant 0 : i32
    return %c0_i32, %c0_i32_0 : i32, i32
  }
  func.func @transform_6(%arg0: i32) -> (i32, i32) {
    %c0_i32 = arith.constant 0 : i32
    %c0_i32_0 = arith.constant 0 : i32
    %c0_i32_1 = arith.constant 0 : i32
    return %c0_i32, %c0_i32_0 : i32, i32
  }
  func.func @transform_7(%arg0: i32) -> (i32, i32) {
    %c0_i32 = arith.constant 0 : i32
    %c0_i32_0 = arith.constant 0 : i32
    %c0_i32_1 = arith.constant 0 : i32
    return %c0_i32, %c0_i32_0 : i32, i32
  }
  func.func @transform_8(%arg0: i32) -> (i32, i32) {
    %c0_i32 = arith.constant 0 : i32
    %c0_i32_0 = arith.constant 0 : i32
    %c0_i32_1 = arith.constant 0 : i32
    return %c0_i32, %c0_i32_0 : i32, i32
  }
  func.func @transform_9(%arg0: i32) -> (i32, i32) {
    %c0_i32 = arith.constant 0 : i32
    %c0_i32_0 = arith.constant 0 : i32
    %c0_i32_1 = arith.constant 0 : i32
    return %c0_i32, %c0_i32_0 : i32, i32
  }
  func.func @transform_10(%arg0: i32) -> (i32, i32) {
    %c0_i32 = arith.constant 0 : i32
    %c0_i32_0 = arith.constant 0 : i32
    %c0_i32_1 = arith.constant 0 : i32
    return %c0_i32, %c0_i32_0 : i32, i32
  }
  func.func @transform_11(%arg0: i32) -> (i32, i32) {
    %c0_i32 = arith.constant 0 : i32
    %c0_i32_0 = arith.constant 0 : i32
    %c0_i32_1 = arith.constant 0 : i32
    return %c0_i32, %c0_i32_0 : i32, i32
  }
  func.func @transform_12(%arg0: i32) -> (i32, i32) {
    %c0_i32 = arith.constant 0 : i32
    %c0_i32_0 = arith.constant 0 : i32
    %c0_i32_1 = arith.constant 0 : i32
    return %c0_i32, %c0_i32_0 : i32, i32
  }
  func.func @transform_13(%arg0: i32) -> (i32, i32) {
    %c0_i32 = arith.constant 0 : i32
    %c0_i32_0 = arith.constant 0 : i32
    %c0_i32_1 = arith.constant 0 : i32
    return %c0_i32, %c0_i32_0 : i32, i32
  }
  func.func @transform_14(%arg0: i32) -> (i32, i32) {
    %c0_i32 = arith.constant 0 : i32
    %c0_i32_0 = arith.constant 0 : i32
    return %arg0, %c0_i32 : i32, i32
  }
  func.func @transform_15(%arg0: i32) -> (i32, i32) {
    %c0_i32 = arith.constant 0 : i32
    %c0_i32_0 = arith.constant 0 : i32
    return %arg0, %c0_i32 : i32, i32
  }
}

</mosaic_0001>

<bundles_post_ra>
// kernel: tpu_custom_call.1
= control target key start
LH: loop header
LB: loop body
LE: loop exit
PB: predicated region body
PF: predicated region fallthrough
CT: control target
= control target key end

     0   :  { %s2970_s0 = inlined_call_operand.vmem [shape: f32[64,24], index: 0, kind: input, shape index: {}]   ;;  %s2971_s1 = inlined_call_operand.vmem [shape: f32[64,64], index: 1, kind: input, shape index: {}]   ;;  %s2972_s2 = inlined_call_operand.hbm [shape: bf16[24,384], index: 2, kind: input, shape index: {}]   ;;  %s2973_s3 = inlined_call_operand.hbm [shape: f32[1,256], index: 3, kind: input, shape index: {}]   ;;  %s2974_s4 = inlined_call_operand.hbm [shape: f32[1,128], index: 4, kind: input, shape index: {}]   ;;  %s2975_s5 = inlined_call_operand.hbm [shape: bf16[256,128], index: 5, kind: input, shape index: {}]   ;;  %s2976_s6 = inlined_call_operand.hbm [shape: f32[1,128], index: 6, kind: input, shape index: {}]   ;;  %s2977_s7 = inlined_call_operand.hbm [shape: bf16[128,128], index: 7, kind: input, shape index: {}]   ;;  %s2978_s8 = inlined_call_operand.vmem [shape: f32[1,128], index: 8, kind: input, shape index: {}]   ;;  %s2979_s9 = inlined_call_operand.vmem [shape: bf16[64,128], index: 9, kind: input, shape index: {}]   ;;  %s2980_s10 = inlined_call_operand.hbm [shape: bf16[128,256], index: 10, kind: input, shape index: {}]   ;;  %s2981_s11 = inlined_call_operand.vmem [shape: f32[1,256], index: 11, kind: input, shape index: {}]   ;;  %s2982_s12 = inlined_call_operand.hbm [shape: bf16[256,128], index: 12, kind: input, shape index: {}]   ;;  %s2983_s13 = inlined_call_operand.vmem [shape: f32[1,128], index: 13, kind: input, shape index: {}]   ;;  %s2984_s14 = inlined_call_operand.hbm [shape: bf16[64,128], index: 14, kind: output, shape index: {0}]   ;;  %s2985_s15 = inlined_call_operand.hbm [shape: f32[64,128], index: 15, kind: output, shape index: {1}]  }
   0x1   :  { %2996 = sst [smem:[#allocation31_spill]] %s2973_s3 }
   0x2   :  { %2997 = sst [smem:[#allocation32_spill]] %s2975_s5 }
   0x3   :  { %2998 = sst [smem:[#allocation33_spill]] %s2977_s7 }
   0x4   :  { %21 = vsyncpa [#allocation3], 0 }
   0x5   :  { %22 = vsyncpa [#allocation6], 0 }
   0x6   :  { %23 = vsyncpa [#allocation9], 0 }
   0x7   :  { %24 = vsyncpa [#allocation12], 0 }
   0x8   :  { %25 = vsyncpa [#allocation15], 0 }
   0x9   :  { %26 = vsyncpa [#allocation4], 0 }
   0xa   :  { %28 = vsyncpa [#allocation4 + $0x1], 0 }
   0xb   :  { %29 = vsyncpa [#allocation18], 0 }
   0xc   :  { %31 = vsyncpa [#allocation18 + $0x1], 0  ;;  %s2643_s18 = smov 0   ;;  %s2645_s19 = smov 0  }
   0xd   :  { %s2647_s20 = smov 0   ;;  %s2649_s21 = smov 0  }
   0xe LB: > { %2999 = sst [smem:[#allocation26_spill]] %s2526_s18  ;;  %s2664_s22 = sadd.s32 4294967295, %s2538_s21   ;;  %s2538_s21 = sphi %s2649_s21, %s3029_s21   ;;  %s2534_s20 = sphi %s2647_s20, %s3031_s20   ;;  %s2530_s19 = sphi %s2645_s19, %s3033_s19   ;;  %s2526_s18 = sphi %s2643_s18, %s3032_s18  }
   0xf   : > { %3000 = sst [smem:[#allocation27_spill]] %s2534_s20  ;;  %s1773_s23 = sadd.s32 4294967294, %s2538_s21  }
  0x10   : > { %s2668_s24 = sadd.s32 1, %s2538_s21   ;;  %s348_s25 = sadd.s32 1, %s2534_s20 }
  0x11   : > { %3001 = sst [smem:[#allocation28_spill]] %s2668_s24  ;;  %s345_s26 = ssub.s32 %s2538_s21, %s2668_s24 }
  0x12   : > { %p358_p0 = scmp.ne.s32.totalorder %s2534_s20, %s2530_s19  ;;  %p346_p1 = scmp.eq.s32.totalorder %s345_s26, 0 }
  0x13   : > { %p359_p2 = scmp.eq.s32.totalorder %s2664_s22, 3  ;;  %p364_p3 = scmp.ne.s32.totalorder %s2530_s19, %s2526_s18 }
  0x14   : > { %p365_p4 = scmp.eq.s32.totalorder %s1773_s23, 3  ;;  %p1774_p7 = scmp.ge.s32.totalorder %s2538_s21, 1 }
  0x15   : > { %s2679_s27 = scalar_select %p346_p1, %s2534_s20, %s348_s25  }
  0x16   : > { %p2681_p5 = por %p359_p2, %p358_p0  ;;  %p2685_p6 = por %p365_p4, %p364_p3 }
  0x17   : > { %3002 = sst [smem:[#allocation29_spill]] %s2679_s27  ;;  %p398_p8 = scmp.lt.s32.totalorder %s2538_s21, 5 }
  0x18   : > { %s3003_s28 = scalar_select %p2681_p5, 1, 0 }
  0x19   : > { %s3004_s29 = scalar_select %p2685_p6, 1, 0 }
  0x1a   : > { %p2990_p9 = scmp.eq.s32.totalorder %s2664_s22, 0  ;;  %p2692_p10 = pnand %p1774_p7, %p398_p8 }
  0x1b   : > { %3005 = sst [smem:[#allocation30_spill]] %s3004_s29  ;;  %s2540_s16 = smov [#allocation5]  }
  0x1c   : > { %s3006_s30 = scalar_select %p2692_p10, 1, 0 }
  0x1d   : > { %s424_s17 = sshll.u32 %s2540_s16, 4  ;;  %p2031_p11 = pneg %p2692_p10  ;;  %s425_s17 = int_to_ptr.vmem [resolvable:$true] %s424_s17 }
  0x1e   : > { %s2541_s23 = smov [#allocation8]   ;;  %s2542_s27 = smov [#allocation11]  }
  0x1f   : > { %s445_s25 = sshll.u32 %s2541_s23, 4  ;;  %p2700_p12 = pnand %p2990_p9, %p2031_p11  ;;  %s446_s25 = int_to_ptr.vmem [resolvable:$true] %s445_s25 }
  0x20   : > { %s469_s20 = sshll.u32 %s2542_s27, 4  ;;  %s2231_s16 = scalar_lea.vmem %s425_s17, 32  ;;  %s470_s20 = int_to_ptr.vmem [resolvable:$true] %s469_s20 }
  0x21   : > { %p2706_p13 = pneg %p2700_p12  ;;  %p2232_p0 = scmp.ne.s32.totalorder %s425_s17, %s2231_s16 }
  0x22   : > { %p2239_p3 = scmp.lt.s32.totalorder %s425_s17, %s425_s17  ;;  %p2240_p4 = scmp.lt.s32.totalorder %s2231_s16, %s2231_s16 }
  0x23   : > { %p2234_p1 = pnand %p2232_p0, %p2706_p13 }
  0x24   : > { %p2241_p7 = por %p2240_p4, %p2239_p3 }
  0x25   : > { %p2235_p2 = pneg %p2234_p1 }
  0x27   : > { %p2242_p8 = pnand %p2241_p7, %p2235_p2 }
  0x29   : > { %2245 = shalt.err (!%p2242_p8)
}
  0x2a   : > { %s3009_s3 = sld [smem:[#allocation31_spill]]  ;;  %s2257_s29 = scalar_lea.vmem %s446_s25, 2048 }
  0x2b   : > { %p2258_p11 = scmp.ne.s32.totalorder %s446_s25, %s2257_s29  ;;  %p2265_p5 = scmp.lt.s32.totalorder %s446_s25, %s446_s25 }
  0x2c   : > { %p2266_p0 = scmp.lt.s32.totalorder %s2257_s29, %s2257_s29 }
  0x2d   : > { %p2260_p9 = pnand %p2258_p11, %p2706_p13 }
  0x2e   : > { %p2267_p1 = por %p2266_p0, %p2265_p5 }
  0x2f   : > { %p2261_p6 = pneg %p2260_p9 }
  0x30   : > { %2037 = dma.hbm_to_vmem [thread:$0]  (!%p2700_p12), %s3009_s3, 32, %s425_s17, [#allocation6]  }
  0x31   : > { %p2268_p10 = pnand %p2267_p1, %p2261_p6 }
  0x33   : > { %2271 = shalt.err (!%p2268_p10)
}
  0x34   : > { %s2994_s16 = smov 64   ;;  %s2995_s18 = smov 4  }
  0x35   : > { %s3010_s5 = sld [smem:[#allocation32_spill]]  ;;  %s2283_s27 = scalar_lea.vmem %s470_s20, 1024 }
  0x36   : > { %p2284_p9 = scmp.ne.s32.totalorder %s470_s20, %s2283_s27  ;;  %p2291_p6 = scmp.lt.s32.totalorder %s470_s20, %s470_s20 }
  0x37   : > { %p2292_p10 = scmp.lt.s32.totalorder %s2283_s27, %s2283_s27 }
  0x38   : > { %p2286_p2 = pnand %p2284_p9, %p2706_p13 }
  0x39   : > { %p2293_p3 = por %p2292_p10, %p2291_p6 }
  0x3a   : > { %p2287_p5 = pneg %p2286_p2 }
  0x3b   : > { %2043 = dma.hbm_to_vmem [thread:$0]  (!%p2700_p12), %s3010_s5, 2048, %s446_s25, [#allocation9], %s2994_s16, %s2994_s16, %s2995_s18  }
  0x3c   : > { %p2294_p4 = pnand %p2293_p3, %p2287_p5 }
  0x3e   : > { %2297 = shalt.err (!%p2294_p4)
}
  0x3f   : > { %s3011_s7 = sld [smem:[#allocation33_spill]]  ;;  %s2545_s25 = smov [#allocation2]  }
  0x40   : > { %s410_s23 = sshll.u32 %s2545_s25, 4  ;;  %s411_s23 = int_to_ptr.vmem [resolvable:$true] %s410_s23 }
  0x41   : > { %s2309_s17 = scalar_lea.vmem %s411_s23, 576  ;;  %p2317_p0 = scmp.lt.s32.totalorder %s411_s23, %s411_s23 }
  0x42   : > { %p2310_p7 = scmp.ne.s32.totalorder %s411_s23, %s2309_s17  ;;  %p2318_p1 = scmp.lt.s32.totalorder %s2309_s17, %s2309_s17 }
  0x44   : > { %p2312_p8 = pnand %p2310_p7, %p2706_p13  ;;  %p2319_p9 = por %p2318_p1, %p2317_p0 }
  0x45   : > { %2049 = dma.hbm_to_vmem [thread:$0]  (!%p2700_p12), %s3011_s7, 1024, %s470_s20, [#allocation12], %s2994_s16, %s2994_s16, %s2995_s18  }
  0x46   : > { %p2313_p11 = pneg %p2312_p8 }
  0x48   : > { %p2320_p2 = pnand %p2319_p9, %p2313_p11 }
  0x4a   : > { %2323 = shalt.err (!%p2320_p2)
}
  0x4b   : > { %s2546_s27 = smov 192   ;;  %s2547_s5 = smov 12  }
  0x4c   : > { %2034 = dma.hbm_to_vmem [thread:$0]  (!%p2700_p12), %s2972_s2, 576, %s411_s23, [#allocation3], %s2546_s27, %s2546_s27, %s2547_s5  }
  0x4d   : > { %s2548_s29 = smov [#allocation7]   ;;  %s2549_s16 = smov [#allocation10]  }
  0x4e   : > { %s435_s25 = sshll.u32 %s2548_s29, 4  ;;  %s459_s18 = sshll.u32 %s2549_s16, 4  ;;  %s436_s25 = int_to_ptr.vmem [resolvable:$true] %s435_s25  ;;  %s460_s18 = int_to_ptr.vmem [resolvable:$true] %s459_s18 }
  0x4f   : > { %s2335_s7 = scalar_lea.vmem %s436_s25, 16  ;;  %s2342_s17 = scalar_lea.vmem %s436_s25, 32 }
  0x50   : > { %p2336_p5 = scmp.ne.s32.totalorder %s436_s25, %s2335_s7  ;;  %p2343_p3 = scmp.lt.s32.totalorder %s436_s25, %s436_s25 }
  0x51   : > { %p2344_p4 = scmp.lt.s32.totalorder %s2342_s17, %s2335_s7 }
  0x52   : > { %p2338_p6 = pnand %p2336_p5, %p2706_p13 }
  0x53   : > { %p2345_p7 = por %p2344_p4, %p2343_p3 }
  0x54   : > { %p2339_p10 = pneg %p2338_p6 }
  0x56   : > { %p2346_p8 = pnand %p2345_p7, %p2339_p10 }
  0x58   : > { %2349 = shalt.err (!%p2346_p8)
}
  0x59   : > { %2040 = dma.hbm_to_vmem [thread:$0]  (!%p2700_p12), %s2974_s4, 16, %s436_s25, [#allocation6]  }
  0x5a   : > { %s2361_s16 = scalar_lea.vmem %s460_s18, 16  ;;  %s2368_s27 = scalar_lea.vmem %s460_s18, 32 }
  0x5b   : > { %p2362_p11 = scmp.ne.s32.totalorder %s460_s18, %s2361_s16  ;;  %p2369_p9 = scmp.lt.s32.totalorder %s460_s18, %s460_s18 }
  0x5c   : > { %p2370_p2 = scmp.lt.s32.totalorder %s2368_s27, %s2361_s16 }
  0x5d   : > { %p2364_p0 = pnand %p2362_p11, %p2706_p13 }
  0x5e   : > { %p2371_p5 = por %p2370_p2, %p2369_p9 }
  0x5f   : > { %p2365_p1 = pneg %p2364_p0 }
  0x61   : > { %p2372_p6 = pnand %p2371_p5, %p2365_p1 }
  0x63   : > { %2375 = shalt.err (!%p2372_p6)
}
  0x64   : > { %2046 = dma.hbm_to_vmem [thread:$0]  (!%p2700_p12), %s2976_s6, 16, %s460_s18, [#allocation9]  }
  0x65   : > { %s2550_s20 = smov [#allocation13]  }
  0x66   : > { %s488_s29 = sshll.u32 %s2550_s20, 4  ;;  %s489_s29 = int_to_ptr.vmem [resolvable:$true] %s488_s29 }
  0x67   : > { %s2387_s25 = scalar_lea.vmem %s489_s29, 2048  ;;  %p2395_p7 = scmp.lt.s32.totalorder %s489_s29, %s489_s29 }
  0x68   : > { %p2388_p10 = scmp.ne.s32.totalorder %s489_s29, %s2387_s25  ;;  %p2396_p8 = scmp.lt.s32.totalorder %s2387_s25, %s2387_s25 }
  0x6a   : > { %p2390_p3 = pnand %p2388_p10, %p2706_p13  ;;  %p2397_p11 = por %p2396_p8, %p2395_p7 }
  0x6c   : > { %p2391_p4 = pneg %p2390_p3 }
  0x6e   : > { %p2398_p0 = pnand %p2397_p11, %p2391_p4 }
  0x70   : > { %2401 = shalt.err (!%p2398_p0)
}
  0x71   : > { %s2551_s17 = smov 128   ;;  %s2552_s5 = smov 8  }
  0x72   : > { %2052 = dma.hbm_to_vmem [thread:$0]  (!%p2700_p12), %s2980_s10, 2048, %s489_s29, [#allocation12], %s2551_s17, %s2551_s17, %s2552_s5  }
  0x73   : > { %s2553_s16 = smov [#allocation14]  }
  0x74   : > { %s504_s27 = sshll.u32 %s2553_s16, 4  ;;  %s505_s27 = int_to_ptr.vmem [resolvable:$true] %s504_s27 }
  0x75   : > { %s2413_s7 = scalar_lea.vmem %s505_s27, 2048  ;;  %p2421_p5 = scmp.lt.s32.totalorder %s505_s27, %s505_s27 }
  0x76   : > { %p2414_p1 = scmp.ne.s32.totalorder %s505_s27, %s2413_s7  ;;  %p2422_p6 = scmp.lt.s32.totalorder %s2413_s7, %s2413_s7 }
  0x78   : > { %p2416_p9 = pnand %p2414_p1, %p2706_p13  ;;  %p2423_p10 = por %p2422_p6, %p2421_p5 }
  0x7a   : > { %p2417_p2 = pneg %p2416_p9 }
  0x7c   : > { %p2424_p3 = pnand %p2423_p10, %p2417_p2 }
  0x7e   : > { %2427 = shalt.err (!%p2424_p3)
}
  0x7f   : > { %s3012_s3 = smov 4   ;;  %s3013_s20 = smov 64  }
  0x80   : > { %2055 = dma.hbm_to_vmem [thread:$0]  (!%p2700_p12), %s2982_s12, 2048, %s505_s27, [#allocation15], %s3013_s20, %s3013_s20, %s3012_s3  }
  0x81   : > { %p3014_p4 = scmp.ne.s32.totalorder %s3006_s30, 0 }
  0x82   : > { %p3015_p13 = scmp.eq.s32.totalorder (!%p3014_p4), %s2664_s22, 0 }
  0x83   : > { %541 = sbr.rel (%p3014_p4) target bundleno = 1574 (0x626), region = 76 }
  0x88   : > { %2497 = dma.done.wait (%p3015_p13), [#allocation3], 576   ;;  %p3016_p7 = pmov %p3015_p13 }
  0x8a   : > { %2499 = vsyncadd (%p3016_p7), [#allocation3], 4294966720  ;;  %p3017_p8 = pmov %p3016_p7 }
  0x8b   : > { %p3018_p11 = pmov %p3016_p7 }
  0x8c   : > { %2501 = dma.done.wait (%p3017_p8), [#allocation6], 48  }
  0x8d   : > { %2503 = vsyncadd (%p3018_p11), [#allocation6], 4294967248  ;;  %p3019_p0 = pmov %p3016_p7 }
  0x8f   : > { %2505 = dma.done.wait (%p3019_p0), [#allocation9], 2064   ;;  %p3020_p12 = pmov %p3019_p0 }
  0x90   : > { %p3021_p1 = pmov %p3019_p0 }
  0x91   : > { %2507 = vsyncadd (%p3020_p12), [#allocation9], 4294965232 }
  0x92   : > { %2509 = dma.done.wait (%p3021_p1), [#allocation12], 3072   ;;  %p3022_p9 = pmov %p3019_p0 }
  0x93   : > { %p3023_p2 = pmov %p3019_p0 }
  0x94   : > { %2511 = vsyncadd (%p3022_p9), [#allocation12], 4294964224 }
  0x95   : > { %2513 = dma.done.wait (%p3023_p2), [#allocation15], 2048   ;;  %p3024_p5 = pmov %p3019_p0 }
  0x96   : > { %s1795_s24 = sshll.u32 %s2664_s22, 1  ;;  %v2554_v0 = vmov 0   ;;  %v649_v1 = vld [vmem:[#allocation2 + $0x18] sm:$0xff]  ;;  %vm679_vm0 = vcmask 1043456   ;;  %v2135_v4 = vld [vmem:[#allocation2 + $0x4] ss:$12 sps:$4 sm:$0xff]   ;;  %v775_v34 = vlaneseq }
  0x97   : > { %2515 = vsyncadd (%p3024_p5), [#allocation15], 4294965248  ;;  %721 = vmatprep.mubr.bf16.mxu1 %v2554_v0  ;;  %p628_p6 = scmp.lt.s32.totalorder %s1795_s24, 7  ;;  %v1803_v2 = vcombine.high %v649_v1, %v649_v1  ;;  %v1802_v3 = vcombine.low %v649_v1, %v649_v1  ;;  %v2137_v5 = vld [vmem:[#allocation2] ss:$12 sps:$4 sm:$0xff]   ;;  %v2140_v11 = vld [vmem:[#allocation8 + $0x70] sm:$0xff]  }
  0x98   : > { %v2138_v9 = vld [vmem:[#allocation8 + $0x78] sm:$0xff]   ;;  %v2141_v12 = vld [vmem:[#allocation8 + $0x30] sm:$0xff]   ;;  %v2142_v14 = vld [vmem:[#allocation8 + $0x68] sm:$0xff]   ;;  %vm675_vm1 = vcmask 195584   ;;  %v2555_v27 = vmov 0.0   ;;  %vm2556_vm2 = vmmov 0  }
  0x99   : > { %s3035_s24 = smov (!%p628_p6, %s1795_s24), 7  ;;  %1805 = vmatprep.subr.msk.bf16.mxu1 %vm679_vm0, %v1803_v2  ;;  %v681_v8 = vsel %vm679_vm0, %v1802_v3, 0  ;;  %v2139_v10 = vld [vmem:[#allocation8 + $0x38] sm:$0xff]   ;;  %1897 = vmatprep.subr.bf16.mxu0 %v2138_v9  ;;  %v2143_v15 = vld [vmem:[#allocation8 + $0x28] sm:$0xff]   ;;  %v2144_v16 = vld [vmem:[#allocation8 + $0x60] sm:$0xff]   ;;  %v2824_v35 = vshrl.u32 %v775_v34, 7 }
  0x9a   : > { %s1796_s30 = sshll.u32 %s3035_s24, 3  ;;  %702 = vmatpush1.bf16.msra.mxu1 %v681_v8  ;;  %1898 = vmatpush3.bf16.msra.mxu0 %v2139_v10  ;;  %v2145_v17 = vld [vmem:[#allocation8 + $0x20] sm:$0xff]   ;;  %v2146_v18 = vld [vmem:[#allocation8 + $0x58] sm:$0xff]   ;;  %v2148_v20 = vld [vmem:[#allocation8 + $0x50] sm:$0xff]   ;;  %s2851_s7 = sand.u32 1, %s2530_s19   ;;  %vm1141_vm3 = vcmask 523264  }
  0x9b   : > { %s631_s5 = scalar_lea.vmem %s2970_s0, %s1796_s30  ;;  %703 = vmatprep.subr.bf16.mxu1 %v2135_v4  ;;  %1899 = vmatprep.subr.bf16.mxu0 %v2140_v11  ;;  %v2147_v19 = vld [vmem:[#allocation8 + $0x18] sm:$0xff]   ;;  %v2149_v21 = vld [vmem:[#allocation8 + $0x10] sm:$0xff]   ;;  %v2150_v22 = vld [vmem:[#allocation8 + $0x48] sm:$0xff]   ;;  %v781_v36 = vsub.s32 1, %v2824_v35  ;;  %v777_v37 = vsub.s32 0, %v2824_v35  ;;  %s1794_s3 = sshll.u32 %s2851_s7, 4 }
  0x9c   : > { %v642_v6 = vld [vmem:[%s631_s5] sm:$0xff]  ;;  %v643_v7 = vld [vmem:[%s631_s5 + $0x8] sm:$0xff]  ;;  %v2151_v23 = vld [vmem:[#allocation8 + $0x8] sm:$0xff]   ;;  %s2857_s29 = scalar_lea.vmem [#allocation17], %s1794_s3  ;;  %s2557_s18 = smov 64  }
  0x9d   : > { %v644_v13 = vpack.c.bf16 %v643_v7, %v642_v6  ;;  %v2152_v24 = vld [vmem:[#allocation8 + $0x40] sm:$0xff]   ;;  %v2154_v26 = vld [vmem:[#allocation2 + $0x20] ss:$0 sps:$4 sm:$0xff]   ;;  %v2158_v32 = vld [vmem:[#allocation11 + $0x28] sm:$0xff]   ;;  %s637_s3 = scalar_lea.vmem %s2971_s1, %s1796_s30  ;;  %s1588_s20 = sshll.u32 %s2857_s29, 4  ;;  %s2885_s20 = int_to_ptr.vmem [resolvable:$true] %s1588_s20 }
  0x9e   : > { %704 = vmatpush1.bf16.msra.mxu1 %v2137_v5  ;;  %1900 = vmatpush3.bf16.msra.mxu0 %v2141_v12  ;;  %v2153_v25 = vld [vmem:[#allocation8] sm:$0xff]   ;;  %v687_v28 = vsel %vm679_vm0, %v2154_v26, 0  ;;  %v2157_v31 = vld [vmem:[#allocation11 + $0x30] sm:$0xff]   ;;  %v773_v38 = vld [vmem:[#allocation5] sm:$0x3]  ;;  %s1888_s25 = sshll.u32 %s2664_s22, 8 }
  0x9f   : > { %1901 = vmatprep.subr.bf16.mxu0 %v2142_v14  ;;  %1955 = vmatprep.subr.bf16.mxu1 %v2555_v27  ;;  %v2155_v29 = vld [vmem:[#allocation2 + $0x8] ss:$12 sps:$4 sm:$0xff]   ;;  %v782_v40 = vrot.slane %v773_v38, %v781_v36  ;;  %v778_v41 = vrot.slane %v773_v38, %v777_v37  ;;  %v2161_v56 = vld [vmem:[#allocation11 + $0x10] sm:$0xff]   ;;  %s2891_s5 = scalar_lea.hbm %s2985_s15, %s1888_s25  ;;  %s1559_s23 = scalar_lea.sflag [#allocation18], %s2851_s7 }
  0xa0   : > { %v2156_v30 = vld [vmem:[#allocation11 + $0x38] sm:$0xff]   ;;  %v2159_v33 = vld [vmem:[#allocation11 + $0x20] sm:$0xff]   ;;  %v2162_v57 = vld [vmem:[#allocation11 + $0x8] sm:$0xff]   ;;  %s2428_s16 = scalar_lea.vmem %s2885_s20, 256  ;;  %p3025_p3 = scmp.ne.s32.totalorder %s3003_s28, 0 }
  0xa1   : > { %1806 = vmatmul.mubr.msk.bf16.vlgmr.msra.gmra.mxu1 %vm675_vm1, %v644_v13  ;;  %v2160_v55 = vld [vmem:[#allocation11 + $0x18] sm:$0xff]   ;;  %v2163_v58 = vld [vmem:[#allocation11] sm:$0xff]   ;;  %v2164_v12 = vld [vmem:[%s2979_s9 + $0x18] sm:$0xff]   ;;  %p2429_p10 = scmp.ne.s32.totalorder %s2885_s20, %s2428_s16  ;;  %s2558_s27 = smov [#allocation17]  }
  0xa2   : > { %1902 = vmatpush3.bf16.msra.mxu0 %v2143_v15  ;;  %1959 = vmatprep.mubr.msk.bf16.mxu1 %vm2556_vm2, %v2555_v27  ;;  %v1808_v3 = vld [vmem:[#allocation10] ss:$0 sm:$0xff]  ;;  %v2168_v26 = vld [vmem:[#allocation13 + $0x70] ss:$8 sps:$4 sm:$0xff]   ;;  %v2179_v34 = vld [vmem:[#allocation13 + $0x44] ss:$8 sps:$4 sm:$0xff]  }
  0xa3   : > { %1903 = vmatprep.subr.bf16.mxu0 %v2144_v16  ;;  %1956 = vmatpush3.bf16.msra.mxu1 %v687_v28  ;;  %v2170_v28 = vld [vmem:[#allocation13 + $0x74] ss:$8 sps:$4 sm:$0xff]   ;;  %v2177_v38 = vld [vmem:[#allocation13 + $0x40] ss:$8 sps:$4 sm:$0xff]   ;;  %p2430_p4 = pnand %p2429_p10, %p3025_p3 }
  0xa4   : > { %1957 = vmatprep.subr.bf16.mxu1 %v2555_v27 }
  0xa5   : > { %p2431_p13 = pneg %p2430_p4 }
  0xa6   : > { %1904 = vmatpush3.bf16.msra.mxu0 %v2145_v17 }
  0xa7   : > { %1905 = vmatprep.subr.bf16.mxu0 %v2146_v18  ;;  %1958 = vmatpush3.bf16.msra.mxu1 %v2155_v29  ;;  %v2173_v29 = vld [vmem:[#allocation13 + $0x64] ss:$8 sps:$4 sm:$0xff]  }
  0xa8   : > { %1963 = vmatprep.subr.bf16.mxu1 %v2555_v27 }
  0xaa   : > { %1906 = vmatpush3.bf16.msra.mxu0 %v2147_v19  ;;  %1960 = vmatmul.mubr.msk.bf16.vlgmr.msra.gmra.mxu1 %vm675_vm1, %v644_v13  ;;  %v2165_v13 = vld [vmem:[%s2979_s9 + $0x10] sm:$0xff]  }
  0xab   : > { %1907 = vmatprep.subr.bf16.mxu0 %v2148_v20  ;;  %1964 = vmatpush3.bf16.msra.mxu1 %v2156_v30 }
  0xac   : > { %1979 = vmatprep.mubr.msk.bf16.mxu1 %vm2556_vm2, %v2555_v27  ;;  %1965 = vmatprep.subr.bf16.mxu1 %v2555_v27 }
  0xae   : > { %1908 = vmatpush3.bf16.msra.mxu0 %v2149_v21 }
  0xaf   : > { %1909 = vmatprep.subr.bf16.mxu0 %v2150_v22  ;;  %1966 = vmatpush3.bf16.msra.mxu1 %v2157_v31  ;;  %v2171_v31 = vld [vmem:[#allocation13 + $0x60] ss:$8 sps:$4 sm:$0xff]  }
  0xb0   : > { %1967 = vmatprep.subr.bf16.mxu1 %v2555_v27 }
  0xb2   : > { %1910 = vmatpush3.bf16.msra.mxu0 %v2151_v23 }
  0xb3   : > { %1911 = vmatprep.subr.bf16.mxu0 %v2152_v24  ;;  %1968 = vmatpush3.bf16.msra.mxu1 %v2158_v32  ;;  %v2166_v24 = vld [vmem:[%s2979_s9 + $0x8] sm:$0xff]  }
  0xb4   : > { %1969 = vmatprep.subr.bf16.mxu1 %v2555_v27  ;;  %v2176_v32 = vld [vmem:[#allocation13 + $0x54] ss:$8 sps:$4 sm:$0xff]  }
  0xb6   : > { %1912 = vmatpush3.bf16.msra.mxu0 %v2153_v25  ;;  %v2167_v25 = vld [vmem:[%s2979_s9] sm:$0xff]  }
  0xb7   : > { %1983 = vmatprep.subr.bf16.mxu0 %v2555_v27  ;;  %1970 = vmatpush3.bf16.msra.mxu1 %v2159_v33 }
  0xb8   : > { %1971 = vmatprep.subr.bf16.mxu1 %v2555_v27 }
  0xbb   : > { %1972 = vmatpush3.bf16.msra.mxu1 %v2160_v55  ;;  %v2189_v55 = vld [vmem:[#allocation13] ss:$8 sps:$4 sm:$0xff]  }
  0xbc   : > { %1973 = vmatprep.subr.bf16.mxu1 %v2555_v27 }
  0xbf   : > { %1974 = vmatpush3.bf16.msra.mxu1 %v2161_v56  ;;  %v2192_v56 = vld [vmem:[#allocation14 + $0x78] sm:$0xff]  }
  0xc0   : > { %1975 = vmatprep.subr.bf16.mxu1 %v2555_v27 }
  0xc3   : > { %1976 = vmatpush3.bf16.msra.mxu1 %v2162_v57  ;;  %v2193_v57 = vld [vmem:[#allocation14 + $0x38] sm:$0xff]  }
  0xc4   : > { %1977 = vmatprep.subr.bf16.mxu1 %v2555_v27 }
  0xc7   : > { %1978 = vmatpush3.bf16.msra.mxu1 %v2163_v58  ;;  %v2194_v58 = vld [vmem:[#allocation14 + $0x70] sm:$0xff]  }
  0xc8   : > { %1306 = vmatprep.subr.bf16.mxu1 %v2170_v28 }
 0x161   : > { %v723_v39 = vpop.f32.mrf.mxu1 }
 0x162   : > { %v785_v46 = vadd.f32 %v778_v41, %v723_v39  ;;  %v2182_v39 = vld [vmem:[#allocation13 + $0x34] ss:$8 sps:$4 sm:$0xff]  }
 0x163   : > { %v725_v42 = vpop.f32.mrf.mxu1 }
 0x164   : > { %v786_v44 = vadd.f32 %v782_v40, %v725_v42  ;;  %v789_v52 = vmax.f32 %v785_v46, 0.0 }
 0x165   : > { %v727_v43 = vpop.f32.mrf.mxu1 }
 0x166   : > { %v787_v45 = vadd.f32 %v778_v41, %v727_v43  ;;  %v790_v50 = vmax.f32 %v786_v44, 0.0  ;;  %v1088_v41 = vld [vmem:[%s637_s3] sm:$0xff]  ;;  %v1089_v43 = vld [vmem:[%s637_s3 + $0x8] sm:$0xff]  ;;  %s2432_s3 = sshll.u32 %s2558_s27, 4  ;;  %s2433_s3 = int_to_ptr.vmem [resolvable:$false] %s2432_s3 }
 0x167   : > { %v729_v47 = vpop.f32.mrf.mxu1  ;;  %p2435_p7 = scmp.lt.s32.totalorder %s2885_s20, %s2433_s3 }
 0x168   : > { %v788_v48 = vadd.f32 %v782_v40, %v729_v47  ;;  %v791_v49 = vmax.f32 %v787_v45, 0.0  ;;  %v2180_v40 = vld [vmem:[#allocation13 + $0x30] ss:$8 sps:$4 sm:$0xff]  }
 0x16a   : > { %v792_v51 = vmax.f32 %v788_v48, 0.0  ;;  %v793_v54 = vpack.c.bf16 %v791_v49, %v789_v52  ;;  %v2837_v59 = vpop.f32.mrf.mxu1  ;;  %v2188_v52 = vld [vmem:[#allocation13 + $0x14] ss:$8 sps:$4 sm:$0xff]  }
 0x16c   : > { %v794_v53 = vpack.c.bf16 %v792_v51, %v790_v50  ;;  %v1961_v60 = vpop.f32.mrf.mxu1  ;;  %v2185_v50 = vld [vmem:[#allocation13 + $0x24] ss:$8 sps:$4 sm:$0xff]   ;;  %v2183_v51 = vld [vmem:[#allocation13 + $0x20] ss:$8 sps:$4 sm:$0xff]  }
 0x16d   : > { %v2195_v60 = vld [vmem:[#allocation14 + $0x30] sm:$0xff]  }
 0x16e   : > { %962 = vmatprep.mubr.bf16.mxu0 %v794_v53  ;;  %v2839_v61 = vpop.f32.mrf.mxu1  ;;  %v2186_v53 = vld [vmem:[#allocation13 + $0x10] ss:$8 sps:$4 sm:$0xff]  }
 0x16f   : > { %963 = vmatmul.mubr.bf16.vlgmr.msra.gmra.mxu0 %v793_v54  ;;  %v2191_v54 = vld [vmem:[#allocation13 + $0x4] ss:$8 sps:$4 sm:$0xff]  }
 0x170   : > { %1991 = vmatprep.mubr.msk.bf16.mxu0 %vm2556_vm2, %v2555_v27  ;;  %v1962_v62 = vpop.f32.mrf.mxu1  ;;  %1984 = vmatpush3.bf16.msra.mxu0 %v2164_v12 }
 0x171   : > { %1985 = vmatprep.subr.bf16.mxu0 %v2555_v27  ;;  %v2196_v62 = vld [vmem:[#allocation14 + $0x68] sm:$0xff]  }
 0x174   : > { %1986 = vmatpush3.bf16.msra.mxu0 %v2165_v13 }
 0x175   : > { %1987 = vmatprep.subr.bf16.mxu0 %v2555_v27 }
 0x178   : > { %1988 = vmatpush3.bf16.msra.mxu0 %v2166_v24 }
 0x179   : > { %1989 = vmatprep.subr.bf16.mxu0 %v2555_v27  ;;  %v2174_v27 = vld [vmem:[#allocation13 + $0x50] ss:$8 sps:$4 sm:$0xff]  }
 0x17c   : > { %1990 = vmatpush3.bf16.msra.mxu0 %v2167_v25 }
 0x17d   : > { %1933 = vmatprep.subr.bf16.mxu0 %v2192_v56 }
 0x22f   : > { %v1913_v63 = vpop.f32.mrf.mxu0 }
 0x231   : > { %v1914_v1 = vpop.f32.mrf.mxu0 }
 0x232   : > { %v1915_v2 = vadd.f32 %v1914_v1, %v1913_v63  ;;  %v2197_v63 = vld [vmem:[#allocation14 + $0x28] sm:$0xff]   ;;  %v2198_v1 = vld [vmem:[#allocation14 + $0x60] sm:$0xff]  }
 0x233   : > { %v1916_v4 = vpop.f32.mrf.mxu0 }
 0x234   : > { %v965_v6 = vadd.f32 %v1915_v2, %v1808_v3  ;;  %v2199_v2 = vld [vmem:[#allocation14 + $0x20] sm:$0xff]  }
 0x235   : > { %v1917_v5 = vpop.f32.mrf.mxu0 }
 0x236   : > { %v1918_v7 = vadd.f32 %v1917_v5, %v1916_v4  ;;  %v971_v9 = vmax.f32 %v965_v6, 0.0  ;;  %v2201_v4 = vld [vmem:[#allocation14 + $0x18] sm:$0xff]  }
 0x238   : > { %v968_v8 = vadd.f32 %v1918_v7, %v1808_v3  ;;  %v2200_v3 = vld [vmem:[#allocation14 + $0x58] sm:$0xff]  }
 0x239   : > { %v1839_v7 = vld [vmem:[#allocation7] ss:$0 sm:$0xff] }
 0x23a   : > { %v972_v10 = vmax.f32 %v968_v8, 0.0 }
 0x23c   : > { %v973_v11 = vpack.c.bf16 %v972_v10, %v971_v9 }
 0x23e   : > { %1980 = vmatmul.mubr.bf16.vlgmr.msra.gmra.mxu1 %v973_v11 }
 0x23f   : > { %1338 = vmatprep.mubr.bf16.mxu1 %v2554_v0  ;;  %v1825_v0 = vld [vmem:[%s2978_s8] ss:$0 sm:$0xff]  ;;  %1307 = vmatpush1.bf16.msra.mxu1 %v2168_v26 }
 0x240   : > { %1308 = vmatprep.subr.bf16.mxu1 %v2173_v29 }
 0x243   : > { %1309 = vmatpush1.bf16.msra.mxu1 %v2171_v31 }
 0x244   : > { %1310 = vmatprep.subr.bf16.mxu1 %v2176_v32 }
 0x247   : > { %1311 = vmatpush1.bf16.msra.mxu1 %v2174_v27 }
 0x248   : > { %1312 = vmatprep.subr.bf16.mxu1 %v2179_v34 }
 0x24b   : > { %1313 = vmatpush1.bf16.msra.mxu1 %v2177_v38 }
 0x24c   : > { %1314 = vmatprep.subr.bf16.mxu1 %v2182_v39 }
 0x24f   : > { %1315 = vmatpush1.bf16.msra.mxu1 %v2180_v40 }
 0x250   : > { %1316 = vmatprep.subr.bf16.mxu1 %v2185_v50 }
 0x253   : > { %1317 = vmatpush1.bf16.msra.mxu1 %v2183_v51 }
 0x254   : > { %1318 = vmatprep.subr.bf16.mxu1 %v2188_v52 }
 0x257   : > { %1319 = vmatpush1.bf16.msra.mxu1 %v2186_v53 }
 0x258   : > { %1320 = vmatprep.subr.bf16.mxu1 %v2191_v54 }
 0x25b   : > { %1321 = vmatpush1.bf16.msra.mxu1 %v2189_v55 }
 0x2fe   : > { %v1079_v14 = vpop.f32.mrf.mxu1 }
 0x2ff   : > { %v1080_v15 = vadd.f32 %v1825_v0, %v1079_v14 }
 0x300   : > { %v1981_v16 = vpop.f32.mrf.mxu1 }
 0x301   : > { %1086 = vst [vmem:[%s2857_s29] sm:$0xff] %v1080_v15  ;;  %v1090_v17 = vmul.f32 0.5, %v1080_v15  ;;  %v2202_v16 = vld [vmem:[#allocation14 + $0x50] sm:$0xff]  }
 0x302   : > { %v1082_v18 = vpop.f32.mrf.mxu1 }
 0x303   : > { %v1092_v19 = vmul.f32 1.442695, %v1090_v17  ;;  %v1083_v20 = vadd.f32 %v1825_v0, %v1082_v18  ;;  %v2203_v17 = vld [vmem:[#allocation14 + $0x10] sm:$0xff]   ;;  %v2204_v18 = vld [vmem:[#allocation14 + $0x48] sm:$0xff]  }
 0x304   : > { %v1982_v21 = vpop.f32.mrf.mxu1 }
 0x305   : > { %2208 = vpow2.f32 %v1092_v19  ;;  %1087 = vst [vmem:[%s2857_s29 + $0x8] sm:$0xff] %v1083_v20  ;;  %v1091_v22 = vmul.f32 0.5, %v1083_v20  ;;  %v2205_v19 = vld [vmem:[#allocation14 + $0x8] sm:$0xff]   ;;  %s2434_s29 = scalar_lea.vmem %s2433_s3, 512 }
 0x306   : > { %p2436_p8 = scmp.lt.s32.totalorder %s2434_s29, %s2428_s16 }
 0x307   : > { %v1094_v23 = vmul.f32 1.442695, %v1091_v22 }
 0x308   : > { %p2437_p11 = por %p2436_p8, %p2435_p7 }
 0x309   : > { %2210 = vpow2.f32 %v1094_v23 }
 0x30a   : > { %p2438_p0 = pnand %p2437_p11, %p2431_p13 }
 0x312   : > { %v2209_v30 = vpop.eup %2208 }
 0x313   : > { %1098 = vrot.lane.b32.xlu0 %v2209_v30, %s2557_s18 }
 0x316   : > { %v2211_v33 = vpop.eup %2210 }
 0x317   : > { %1100 = vrot.lane.b32.xlu0 %v2211_v33, %s2557_s18 }
 0x385   : > { %v1099_v42 = vpop.permute.xlu0 %1098 }
 0x386   : > { %v1104_v44 = vmul.f32 %v1099_v42, %v1088_v41 }
 0x388   : > { %v1106_v47 = vadd.f32 %v1104_v44, %v1080_v15 }
 0x389   : > { %v1101_v45 = vpop.permute.xlu0 %1100 }
 0x38a   : > { %v1105_v46 = vmul.f32 %v1101_v45, %v1089_v43 }
 0x38c   : > { %v1107_v48 = vadd.f32 %v1105_v46, %v1083_v20  ;;  %v2207_v20 = vld [vmem:[#allocation14] sm:$0xff]  }
 0x38e   : > { %v1108_v49 = vpack.c.bf16 %v1107_v48, %v1106_v47 }
 0x390   : > { %1992 = vmatmul.mubr.msk.bf16.vlgmr.msra.gmra.mxu0 %vm1141_vm3, %v1108_v49 }
 0x391   : > { %1934 = vmatpush3.bf16.msra.mxu0 %v2193_v57 }
 0x392   : > { %1935 = vmatprep.subr.bf16.mxu0 %v2194_v58 }
 0x395   : > { %1936 = vmatpush3.bf16.msra.mxu0 %v2195_v60 }
 0x396   : > { %1937 = vmatprep.subr.bf16.mxu0 %v2196_v62 }
 0x399   : > { %1938 = vmatpush3.bf16.msra.mxu0 %v2197_v63 }
 0x39a   : > { %1939 = vmatprep.subr.bf16.mxu0 %v2198_v1 }
 0x39d   : > { %1940 = vmatpush3.bf16.msra.mxu0 %v2199_v2 }
 0x39e   : > { %1941 = vmatprep.subr.bf16.mxu0 %v2200_v3 }
 0x3a1   : > { %1942 = vmatpush3.bf16.msra.mxu0 %v2201_v4 }
 0x3a2   : > { %1943 = vmatprep.subr.bf16.mxu0 %v2202_v16 }
 0x3a5   : > { %1944 = vmatpush3.bf16.msra.mxu0 %v2203_v17 }
 0x3a6   : > { %1945 = vmatprep.subr.bf16.mxu0 %v2204_v18 }
 0x3a9   : > { %1946 = vmatpush3.bf16.msra.mxu0 %v2205_v19 }
 0x450   : > { %v1179_v5 = vpop.f32.mrf.mxu0 }
 0x451   : > { %v1180_v6 = vadd.f32 %v1179_v5, %v2837_v59  ;;  %v2206_v59 = vld [vmem:[#allocation14 + $0x40] sm:$0xff]  }
 0x452   : > { %v1993_v8 = vpop.f32.mrf.mxu0  ;;  %1947 = vmatprep.subr.bf16.mxu0 %v2206_v59 }
 0x453   : > { %v1193_v10 = vadd.f32 %v1839_v7, %v1180_v6  ;;  %1948 = vmatpush3.bf16.msra.mxu0 %v2207_v20 }
 0x454   : > { %v1182_v9 = vpop.f32.mrf.mxu0 }
 0x455   : > { %v1183_v11 = vadd.f32 %v1182_v9, %v2839_v61  ;;  %v1195_v0 = vmax.f32 %v1193_v10, 0.0  ;;  %v1214_v61 = vld [vmem:[%s2981_s11] sm:$0x3] }
 0x456   : > { %v1994_v12 = vpop.f32.mrf.mxu0  ;;  %v1223_v22 = vrot.slane %v1214_v61, %v781_v36  ;;  %v1219_v23 = vrot.slane %v1214_v61, %v777_v37 }
 0x457   : > { %v1194_v13 = vadd.f32 %v1839_v7, %v1183_v11 }
 0x459   : > { %v1196_v14 = vmax.f32 %v1194_v13, 0.0 }
 0x45b   : > { %v1197_v15 = vpack.c.bf16 %v1196_v14, %v1195_v0 }
 0x45d   : > { %1339 = vmatmul.mubr.bf16.vlgmr.msra.gmra.mxu1 %v1197_v15 }
 0x51d   : > { %v1340_v21 = vpop.f32.mrf.mxu1 }
 0x51e   : > { %v1341_v29 = vadd.f32 %v1340_v21, %v1219_v23 }
 0x51f   : > { %v1342_v24 = vpop.f32.mrf.mxu1 }
 0x520   : > { %v1343_v26 = vadd.f32 %v1342_v24, %v1223_v22  ;;  %v1349_v34 = vmax.f32 %v1341_v29, 0.0 }
 0x521   : > { %v1344_v25 = vpop.f32.mrf.mxu1 }
 0x522   : > { %v1345_v28 = vadd.f32 %v1344_v25, %v1219_v23  ;;  %v1350_v33 = vmax.f32 %v1343_v26, 0.0 }
 0x523   : > { %v1346_v30 = vpop.f32.mrf.mxu1 }
 0x524   : > { %v1347_v31 = vadd.f32 %v1346_v30, %v1223_v22  ;;  %v1351_v32 = vmax.f32 %v1345_v28, 0.0 }
 0x526   : > { %v1352_v27 = vmax.f32 %v1347_v31, 0.0  ;;  %v1353_v36 = vpack.c.bf16 %v1351_v32, %v1349_v34 }
 0x528   : > { %v1354_v38 = vpack.c.bf16 %v1352_v27, %v1350_v33 }
 0x52a   : > { %1522 = vmatprep.mubr.bf16.mxu0 %v1354_v38 }
 0x52b   : > { %1523 = vmatmul.mubr.bf16.vlgmr.msra.gmra.mxu0 %v1353_v36 }
 0x52c   : > { %2441 = shalt.err (!%p2438_p0)
}
 0x52d   : > { %s2442_s24 = scalar_lea.hbm %s2891_s5, 256  ;;  %s2446_s26 = scalar_lea.hbm %s2985_s15, 1024 }
 0x52e   : > { %p2443_p12 = scmp.ne.s32.totalorder %s2891_s5, %s2442_s24  ;;  %p2447_p2 = scmp.lt.s32.totalorder %s2891_s5, %s2985_s15 }
 0x52f   : > { %p2448_p5 = scmp.lt.s32.totalorder %s2446_s26, %s2442_s24 }
 0x530   : > { %p2444_p1 = pnand %p2443_p12, %p3025_p3 }
 0x531   : > { %p2449_p6 = por %p2448_p5, %p2447_p2 }
 0x532   : > { %p2445_p9 = pneg %p2444_p1 }
 0x534   : > { %p2450_p10 = pnand %p2449_p6, %p2445_p9 }
 0x536   : > { %2453 = shalt.err (!%p2450_p10)
}
 0x537   : > { %s2559_s16 = smov 128   ;;  %s2560_s3 = smov 8   ;;  %v1856_v37 = vld [vmem:[%s2983_s13] ss:$0 sm:$0xff] }
 0x538   : > { %2028 = dma.vmem_to_hbm [thread:$0]  (%p3025_p3), %s2885_s20, 256, %s2891_s5, %s1559_s23, %s2559_s16, %s2559_s16, %s2560_s3  }
 0x539   : > { %s1793_s20 = sshll.u32 %s2851_s7, 3  ;;  %s1887_s5 = sshll.u32 %s2664_s22, 7 }
 0x53a   : > { %s619_s23 = scalar_lea.vmem [#allocation16], %s1793_s20  ;;  %s2924_s17 = scalar_lea.hbm %s2984_s14, %s1887_s5 }
 0x53b   : > { %s1572_s24 = sshll.u32 %s619_s23, 4  ;;  %s1554_s27 = scalar_lea.sflag [#allocation4], %s2851_s7  ;;  %s2926_s24 = int_to_ptr.vmem [resolvable:$true] %s1572_s24 }
 0x53c   : > { %s2454_s16 = scalar_lea.vmem %s2926_s24, 128  ;;  %s2561_s22 = smov [#allocation16]  }
 0x53d   : > { %p2455_p4 = scmp.ne.s32.totalorder %s2926_s24, %s2454_s16  ;;  %s2458_s3 = sshll.u32 %s2561_s22, 4  ;;  %s2459_s3 = int_to_ptr.vmem [resolvable:$false] %s2458_s3 }
 0x53e   : > { %s2460_s29 = scalar_lea.vmem %s2459_s3, 256  ;;  %p2461_p8 = scmp.lt.s32.totalorder %s2926_s24, %s2459_s3 }
 0x53f   : > { %p2456_p13 = pnand %p2455_p4, %p3025_p3  ;;  %p2462_p11 = scmp.lt.s32.totalorder %s2460_s29, %s2454_s16 }
 0x541   : > { %p2457_p7 = pneg %p2456_p13  ;;  %p2463_p0 = por %p2462_p11, %p2461_p8 }
 0x543   : > { %p2464_p12 = pnand %p2463_p0, %p2457_p7 }
 0x5eb   : > { %v1949_v35 = vpop.f32.mrf.mxu0 }
 0x5ed   : > { %v1950_v39 = vpop.f32.mrf.mxu0 }
 0x5ee   : > { %v1951_v40 = vadd.f32 %v1950_v39, %v1949_v35 }
 0x5ef   : > { %v1952_v41 = vpop.f32.mrf.mxu0 }
 0x5f0   : > { %v1525_v42 = vadd.f32 %v1951_v40, %v1856_v37 }
 0x5f1   : > { %v1953_v43 = vpop.f32.mrf.mxu0 }
 0x5f2   : > { %v1873_v44 = vmul.f32 -1.442695, %v1525_v42  ;;  %v1954_v45 = vadd.f32 %v1953_v43, %v1952_v41 }
 0x5f4   : > { %2212 = vpow2.f32 %v1873_v44  ;;  %v1528_v46 = vadd.f32 %v1954_v45, %v1856_v37 }
 0x5f6   : > { %v1874_v47 = vmul.f32 -1.442695, %v1528_v46 }
 0x5f8   : > { %2214 = vpow2.f32 %v1874_v47 }
 0x601   : > { %v2213_v48 = vpop.eup %2212 }
 0x602   : > { %v1537_v49 = vadd.f32 1.0, %v2213_v48 }
 0x604   : > { %2216 = vrcp.f32 %v1537_v49 }
 0x605   : > { %v2215_v50 = vpop.eup %2214 }
 0x606   : > { %v1538_v51 = vadd.f32 1.0, %v2215_v50 }
 0x608   : > { %2218 = vrcp.f32 %v1538_v51 }
 0x611   : > { %v2217_v52 = vpop.eup %2216 }
 0x615   : > { %v2219_v53 = vpop.eup %2218 }
 0x616   : > { %v1892_v54 = vpack.c.bf16 %v2219_v53, %v2217_v52 }
 0x618   : > { %1893 = vst [vmem:[%s619_s23] sm:$0xff] %v1892_v54  }
 0x619   : > { %2467 = shalt.err (!%p2464_p12)
}
 0x61a   : > { %s2468_s30 = scalar_lea.hbm %s2924_s17, 128  ;;  %s2472_s23 = scalar_lea.hbm %s2984_s14, 512 }
 0x61b   : > { %p2469_p1 = scmp.ne.s32.totalorder %s2924_s17, %s2468_s30  ;;  %p2473_p5 = scmp.lt.s32.totalorder %s2924_s17, %s2984_s14 }
 0x61c   : > { %p2474_p6 = scmp.lt.s32.totalorder %s2472_s23, %s2468_s30 }
 0x61d   : > { %p2470_p9 = pnand %p2469_p1, %p3025_p3 }
 0x61e   : > { %p2475_p10 = por %p2474_p6, %p2473_p5 }
 0x61f   : > { %p2471_p2 = pneg %p2470_p9 }
 0x621   : > { %p2476_p4 = pnand %p2475_p10, %p2471_p2 }
 0x623   : > { %2479 = shalt.err (!%p2476_p4)
}
 0x624   : > { %s2562_s16 = smov 4  }
 0x625   : > { %2027 = dma.vmem_to_hbm [thread:$0]  (%p3025_p3), %s2926_s24, 128, %s2924_s17, %s1554_s27, %s2557_s18, %s2557_s18, %s2562_s16  }
 0x626 PF: > { %s3026_s22 = sld [smem:[#allocation26_spill]]  ;;  %p2079_p13 = scmp.ge.s32.totalorder %s2538_s21, 2 }
 0x627   : > { %s3027_s3 = sld [smem:[#allocation30_spill]] }
 0x62c   : > { %s1603_s29 = sand.u32 1, %s3026_s22  }
 0x62d   : > { %p3028_p7 = scmp.ne.s32.totalorder %s3027_s3, 0  ;;  %s1604_s30 = scalar_lea.sflag [#allocation4], %s1603_s29 }
 0x62f   : > { %p2057_p8 = pnand %p2079_p13, %p3028_p7 }
 0x631   : > { %p2058_p11 = pneg %p2057_p8 }
 0x633   : > { %2517 = dma.done.wait (%p2058_p11), %s1604_s30, 128  }
 0x634   : > { %2519 = vsyncadd (%p2058_p11), %s1604_s30, 4294967168  ;;  %s1613_s28 = scalar_lea.sflag [#allocation18], %s1603_s29 }
 0x635   : > { %2521 = dma.done.wait (%p2058_p11), %s1613_s28, 256  }
 0x636   : > { %2523 = vsyncadd (%p2058_p11), %s1613_s28, 4294967040  ;;  %s3029_s21 = sld [smem:[#allocation28_spill]]  ;;  %s3032_s18 = smov %s2530_s19 }
 0x637   : > { %s3030_s7 = sld [smem:[#allocation27_spill]] }
 0x638   : > { %s3031_s20 = sld [smem:[#allocation29_spill]] }
 0x63c   : > { %p34_p3 = scmp.ge.s32.totalorder %s3029_s21, 6  }
 0x63d   : > { %s3033_s19 = smov %s3030_s7 }
 0x63e   :  { %36 = sbr.rel (!%p34_p3) target bundleno = 14 (0xe), region = 164 }
 0x643   :  { %1618 = vsyncpa [#allocation3], 1 }
 0x644   :  { %1620 = vsyncpa [#allocation3 + $0x1], 1 }
 0x645   :  { %1621 = vsyncpa [#allocation6], 1 }
 0x646   :  { %1622 = vsyncpa [#allocation9], 1 }
 0x647   :  { %1623 = vsyncpa [#allocation12], 1 }
 0x648   :  { %1624 = vsyncpa [#allocation15], 1 }
 0x649   :  { %1625 = vsyncpa [#allocation4], 1 }
 0x64a   :  { %1627 = vsyncpa [#allocation4 + $0x1], 1 }
 0x64b   :  { %1628 = vsyncpa [#allocation18], 1 }
 0x64c   :  { %1630 = vsyncpa [#allocation18 + $0x1], 1 }

</bundles_post_ra>
